<compile_context>
chip_gen: v7x
topology: tpu7x:2x2x1
jax: 0.10.0
libtpu: 0.0.40
codegen_flags: <defaults>
</compile_context>

<pallas_src>
import jax
import jax.numpy as jnp
from jax.experimental import pallas as pl
from jax.experimental.pallas import tpu as pltpu


def _cdiv(a, b):
    return -(-a // b)


def _vmem_capacity_bytes():
    try:
        return int(pltpu.get_tpu_info().vmem_capacity_bytes)
    except Exception:
        return 64 * 1024 * 1024          # conservative (v7x-sized) fallback


def _choose_hidden_chunk(H, D, wbytes, weight_budget_bytes):
    """Largest ht dividing H (512/256/128 granular) whose double-buffered fused
    w13 + w3 tiles (2 * 3*D*ht*wbytes) fit the weight budget."""
    max_ht = max(weight_budget_bytes // (2 * 3 * D * wbytes), 1)
    if H <= max_ht:
        return H
    for gran in (512, 256, 128):
        if H % gran:
            continue
        cand = (max_ht // gran) * gran
        while cand >= gran:
            if H % cand == 0:
                return cand
            cand -= gran
    return H                              # odd H that cannot be chunked cleanly


# ---------------------------------------------------------------------------
# Grouped expert kernel.
#   grid = (token_tiles t over sorted/padded rows, hidden_chunks h)
#   per step:  y = silu(x @ w1_chunk) * (x @ w2_chunk) @ w3_chunk  (f32 accumulate)
#   weights are indexed by the scalar-prefetched per-tile expert id te[t].
# ---------------------------------------------------------------------------
def _swiglu_tile(x_ref, w13_ref, w3_ref):
    x = x_ref[...]                                                     # [tm, D]
    hh = jnp.dot(x, w13_ref[0], preferred_element_type=jnp.float32)   # [tm, 2*ht]
    ht = hh.shape[-1] // 2
    g = jax.nn.silu(hh[:, :ht]) * hh[:, ht:]                          # f32 elementwise
    return jnp.dot(g.astype(w3_ref.dtype), w3_ref[0],
                   preferred_element_type=jnp.float32)                # [tm, D]


def _grouped_kernel_acc_in_out(te_ref, tv_ref, x_ref, w13_ref, w3_ref, o_ref):
    # f32 output: accumulate straight into the resident output block (no scratch).
    t = pl.program_id(0)
    h = pl.program_id(1)

    @pl.when(h == 0)
    def _init():
        o_ref[...] = jnp.zeros_like(o_ref)

    @pl.when(tv_ref[t] > 0)               # fully-padded trailing tiles skip all compute
    def _compute():
        o_ref[...] += _swiglu_tile(x_ref, w13_ref, w3_ref)


def _grouped_kernel_scratch(te_ref, tv_ref, x_ref, w13_ref, w3_ref, o_ref, acc_ref):
    # narrow output dtype: keep an f32 accumulator, cast once at the last chunk.
    t = pl.program_id(0)
    h = pl.program_id(1)

    @pl.when(h == 0)
    def _init():
        acc_ref[...] = jnp.zeros_like(acc_ref)

    @pl.when(tv_ref[t] > 0)
    def _compute():
        acc_ref[...] += _swiglu_tile(x_ref, w13_ref, w3_ref)

    @pl.when(h == pl.num_programs(1) - 1)
    def _finalize():
        o_ref[...] = acc_ref[...].astype(o_ref.dtype)


def moe_experts_grouped(x_flat, topk_idx, w1, w2, w3, *,
                        token_tile=512, out_dtype=None):
    """Grouped (token-sorted) MoE SwiGLU experts.

    x_flat:   [N, D]    activations (cast to the weights' dtype for the MXU)
    topk_idx: [N, K]    int expert assignments (each contributes with weight 1.0,
                        matching the reference's unweighted 0/1 multi-hot combine)
    w1, w2:   [E, D, H] and w3: [E, H, D] in the compute dtype (e.g. bf16)
    returns   [N, D]    float32
    """
    N, D = x_flat.shape
    E, _, H = w1.shape
    K = topk_idx.shape[-1]
    A = N * K
    w_dtype = w1.dtype
    wbytes = jnp.dtype(w_dtype).itemsize
    if out_dtype is None:
        out_dtype = w_dtype
    obytes = jnp.dtype(out_dtype).itemsize
    acc_in_out = jnp.dtype(out_dtype) == jnp.dtype(jnp.float32)

    # ---- token tile (multiple of 16 sublanes for bf16; don't exceed the workload) ----
    tm = max(16, (min(int(token_tile), 1024) // 16) * 16)
    tm = min(tm, max(16, _cdiv(A, 16) * 16))
    num_tiles = _cdiv(A, tm) + E          # static upper bound on expert-padded tiles
    P = num_tiles * tm

    # ---- generation-aware VMEM budget -> hidden chunk size ----
    vmem_cap = _vmem_capacity_bytes()
    vmem_limit = (vmem_cap * 7) // 8      # ~112 MiB on 128 MiB parts, ~56 MiB on v7x
    fixed = 2 * tm * D * wbytes           # x double-buffer
    fixed += 2 * tm * D * obytes          # output double-buffer
    if not acc_in_out:
        fixed += tm * D * 4               # f32 accumulator scratch
    weight_budget = vmem_limit - fixed - (6 << 20)   # compiler-internal headroom
    ht = _choose_hidden_chunk(H, D, wbytes, weight_budget)
    num_h = H // ht

    # ---- sort assignments by expert; pad each expert's rows to a multiple of tm ----
    expert_of = topk_idx.reshape(-1).astype(jnp.int32)                 # [A]
    token_of = jnp.arange(A, dtype=jnp.int32) // K                     # [A]
    order = jnp.argsort(expert_of)
    sorted_expert = expert_of[order]
    sorted_token = token_of[order]

    group_sizes = jnp.zeros((E,), jnp.int32).at[expert_of].add(1)      # [E]
    group_start = jnp.concatenate(
        [jnp.zeros((1,), jnp.int32), jnp.cumsum(group_sizes)[:-1]])    # [E] exclusive
    tiles_per_group = (group_sizes + tm - 1) // tm                     # [E]
    tile_ends = jnp.cumsum(tiles_per_group)                            # [E] inclusive
    tile_start = tile_ends - tiles_per_group                           # [E] exclusive
    padded_start = tile_start * tm                                     # [E]

    t_arr = jnp.arange(num_tiles, dtype=jnp.int32)
    tile_expert = jnp.clip(jnp.searchsorted(tile_ends, t_arr, side="right"),
                           0, E - 1).astype(jnp.int32)
    tile_valid = jnp.clip(
        group_sizes[tile_expert] - (t_arr - tile_start[tile_expert]) * tm,
        0, tm).astype(jnp.int32)

    # gather x into sorted/padded layout (padding rows point at token 0; their finite
    # garbage outputs are never read back)
    p_arr = jnp.arange(P, dtype=jnp.int32)
    p_expert = tile_expert[p_arr // tm]
    local = p_arr - padded_start[p_expert]
    row_valid = local < group_sizes[p_expert]
    src_pos = jnp.clip(group_start[p_expert] + local, 0, A - 1)
    row_token = jnp.where(row_valid, sorted_token[src_pos], 0)
    x_sorted = x_flat[row_token].astype(w_dtype)                       # [P, D]

    # destination row of every original assignment (for the combine gather)
    r_arr = jnp.arange(A, dtype=jnp.int32)
    dest_row_sorted = padded_start[sorted_expert] + (r_arr - group_start[sorted_expert])
    dest_by_assignment = jnp.zeros((A,), jnp.int32).at[order].set(
        dest_row_sorted.astype(jnp.int32))

    # fuse w1|w2, chunk-interleaved so chunk h is one contiguous [D, 2*ht] slab
    # TODO(synk): pre-fuse once at parameter-prep time at real model scale.
    w13 = jnp.concatenate(
        [w1.reshape(E, D, num_h, ht), w2.reshape(E, D, num_h, ht)], axis=3
    ).reshape(E, D, 2 * H)

    kernel = _grouped_kernel_acc_in_out if acc_in_out else _grouped_kernel_scratch
    scratch = [] if acc_in_out else [pltpu.VMEM((tm, D), jnp.float32)]

    y_sorted = pl.pallas_call(
        kernel,
        out_shape=jax.ShapeDtypeStruct((P, D), out_dtype),
        grid_spec=pltpu.PrefetchScalarGridSpec(
            num_scalar_prefetch=2,       # 1-D per-tile expert ids + valid counts -> SMEM
            grid=(num_tiles, num_h),
            in_specs=[
                pl.BlockSpec((tm, D), lambda t, h, te, tv: (t, 0)),              # x
                pl.BlockSpec((1, D, 2 * ht), lambda t, h, te, tv: (te[t], 0, h)),  # w1|w2
                pl.BlockSpec((1, ht, D), lambda t, h, te, tv: (te[t], h, 0)),      # w3
            ],
            out_specs=pl.BlockSpec((tm, D), lambda t, h, te, tv: (t, 0)),
            scratch_shapes=scratch,
        ),
        compiler_params=pltpu.CompilerParams(
            # expert-contiguous tiles: megacore splits the tile axis ~by expert, so the
            # second core does not re-stream the other core's expert weights.
            dimension_semantics=("parallel", "arbitrary"),
            vmem_limit_bytes=int(vmem_limit)),
    )(tile_expert, tile_valid, x_sorted, w13, w3)

    # combine: unweighted 0/1 multi-hot sum over the top-k experts (matches reference)
    y_rows = y_sorted[dest_by_assignment].astype(jnp.float32)          # [A, D]
    return y_rows.reshape(N, K, D).sum(axis=1)                         # [N, D] f32


# ---------------------------------------------------------------------------
# Full forward (matches ParallelMoELayer.forward)
# ---------------------------------------------------------------------------
def parallel_moe_forward(x, params, *, top_k=2,
                         router_z_loss_coef=0.001, router_load_loss_coef=0.001,
                         compute_dtype=jnp.bfloat16, token_tile=512, out_dtype=None):
    orig_shape = x.shape
    D = orig_shape[-1]
    x_flat = x.reshape(-1, D).astype(jnp.float32)

    # Router: tiny [N, E] GEMM kept in XLA (f32 so top-k / aux loss stay exact).
    logits_flat = x_flat @ params["router_w_t"].astype(jnp.float32)    # [N, E]
    E = logits_flat.shape[-1]
    probs_flat = jax.nn.softmax(logits_flat, axis=-1)

    # TODO(synk): the reference combines with an unweighted 0/1 multi-hot mask over the
    # top-k experts (as the given PyTorch module is written); standard Mixtral would
    # scale each expert output by its normalized top-k gate probability.
    _, topk_idx = jax.lax.top_k(probs_flat, top_k)                     # [N, K]

    if out_dtype is None:
        out_dtype = compute_dtype        # halves output writeback in bf16 mode
    out_flat = moe_experts_grouped(
        x_flat, topk_idx,
        params["w1"].astype(compute_dtype),
        params["w2"].astype(compute_dtype),
        params["w3"].astype(compute_dtype),
        token_tile=token_tile, out_dtype=out_dtype)
    output = out_flat.astype(x.dtype).reshape(orig_shape)              # dropout p=0 -> id

    # aux loss (same shapes/reductions as the reference _compute_aux_loss)
    logits = logits_flat.reshape(orig_shape[:-1] + (E,))
    probs = probs_flat.reshape(orig_shape[:-1] + (E,))
    router_z_loss = jnp.mean(jax.scipy.special.logsumexp(logits, axis=-1)) ** 2
    expert_load = jnp.sum(probs, axis=0)
    load_loss = (jnp.std(expert_load, ddof=1) / jnp.mean(expert_load)) ** 2
    aux_loss = router_z_loss_coef * router_z_loss + router_load_loss_coef * load_loss
    return output, aux_loss


# pure-JAX f32 reference for the correctness check
def _reference_forward(x, params, top_k=2):
    orig_shape = x.shape
    D = orig_shape[-1]
    xf = x.reshape(-1, D)
    logits = xf @ params["router_w_t"]
    probs = jax.nn.softmax(logits, axis=-1)
    _, idx = jax.lax.top_k(probs, top_k)
    E = logits.shape[-1]
    mask = jnp.sum(jax.nn.one_hot(idx, E, dtype=jnp.float32), axis=1)
    out = jnp.zeros_like(xf)
    for e in range(E):
        xe = xf * mask[:, e:e + 1]
        he = jax.nn.silu(xe @ params["w1"][e]) * (xe @ params["w2"][e])
        out = out + (he @ params["w3"][e]) * mask[:, e:e + 1]
    lg = logits.reshape(orig_shape[:-1] + (E,))
    pr = probs.reshape(orig_shape[:-1] + (E,))
    z = jnp.mean(jax.scipy.special.logsumexp(lg, axis=-1)) ** 2
    load = jnp.sum(pr, axis=0)
    l = (jnp.std(load, ddof=1) / jnp.mean(load)) ** 2
    return out.reshape(orig_shape), 0.001 * z + 0.001 * l


if __name__ == "__main__":
    # lane-dense demo dims (multiples of 128), small enough to run instantly
    batch, seq, dim, hidden_dim, num_experts, top_k = 2, 16, 128, 256, 8, 2

    key = jax.random.PRNGKey(0)
    kr, k1, k2, k3, kx = jax.random.split(key, 5)
    params = {
        "router_w_t": jax.random.normal(kr, (dim, num_experts), jnp.float32) * 0.05,
        "w1": jax.random.normal(k1, (num_experts, dim, hidden_dim), jnp.float32) * 0.05,
        "w2": jax.random.normal(k2, (num_experts, dim, hidden_dim), jnp.float32) * 0.05,
        "w3": jax.random.normal(k3, (num_experts, hidden_dim, dim), jnp.float32) * 0.05,
    }
    x = jax.random.normal(kx, (batch, seq, dim), jnp.float32)

    ref_out, ref_aux = _reference_forward(x, params, top_k=top_k)

    # f32 mode (acc-in-output kernel path): tight check, small token tile so several
    # grouped tiles (with partial padding) are exercised.
    out32, aux32 = parallel_moe_forward(x, params, top_k=top_k,
                                        compute_dtype=jnp.float32, token_tile=16)
    out32 = jax.block_until_ready(out32)
    aux32 = jax.block_until_ready(aux32)
    assert out32.shape == x.shape
    assert jnp.allclose(out32, ref_out, rtol=1e-3, atol=1e-3)
    assert jnp.allclose(aux32, ref_aux, rtol=1e-4, atol=1e-5)

    # bf16 weights/activations/output (the perf path, f32-scratch kernel): looser tol.
    out16, aux16 = parallel_moe_forward(x, params, top_k=top_k,
                                        compute_dtype=jnp.bfloat16, token_tile=16)
    out16 = jax.block_until_ready(out16)
    aux16 = jax.block_until_ready(aux16)
    assert out16.shape == x.shape
    assert jnp.allclose(out16, ref_out, rtol=2e-2, atol=2e-2)
    assert jnp.allclose(aux16, ref_aux, rtol=1e-4, atol=1e-5)

    # default token_tile path (tile auto-clamped to the tiny workload)
    out_def, _ = parallel_moe_forward(x, params, top_k=top_k,
                                      compute_dtype=jnp.bfloat16)
    out_def = jax.block_until_ready(out_def)
    assert jnp.allclose(out_def, ref_out, rtol=2e-2, atol=2e-2)

    print("KERNEL_OK")
</pallas_src>

<mosaic_0001>
module attributes {stable_mosaic.version = 11 : i64} {
  func.func @_grouped_kernel_acc_in_out(%arg0: i32, %arg1: i32, %arg2: memref<12xi32, #tpu.memory_space<smem>>, %arg3: memref<12xi32, #tpu.memory_space<smem>>, %arg4: memref<16x128xf32, #tpu.memory_space<vmem>>, %arg5: memref<1x128x512xf32, #tpu.memory_space<vmem>>, %arg6: memref<1x256x128xf32, #tpu.memory_space<vmem>>, %arg7: memref<16x128xf32, #tpu.memory_space<vmem>>) attributes {dimension_semantics = [#tpu.dimension_semantics<parallel>, #tpu.dimension_semantics<arbitrary>], iteration_bounds = array<i64: 12, 1>, scalar_prefetch = 2 : i64, scratch_operands = 0 : i64, tpu.core_type = #tpu.core_type<tc>, window_params = [{transform_indices = @transform_0, window_bounds = array<i64: 16, 128>}, {transform_indices = @transform_1, window_bounds = array<i64: 1, 128, 512>}, {transform_indices = @transform_2, window_bounds = array<i64: 1, 256, 128>}, {transform_indices = @transform_3, window_bounds = array<i64: 16, 128>}]} {
    %c0_i32 = arith.constant 0 : i32
    %0 = arith.cmpi eq, %arg1, %c0_i32 : i32
    %1 = arith.extui %0 : i1 to i32
    %c0_i32_0 = arith.constant 0 : i32
    %2 = arith.cmpi ne, %1, %c0_i32_0 : i32
    scf.if %2 {
      %cst = arith.constant 0.000000e+00 : f32
      %8 = vector.broadcast %cst : f32 to vector<16x128xf32>
      %c0 = arith.constant 0 : index
      %c0_3 = arith.constant 0 : index
      %9 = vector.load %arg7[%c0, %c0_3] : memref<16x128xf32, #tpu.memory_space<vmem>>, vector<16x128xf32>
      tpu.vector_store %arg7[%c0, %c0_3], %8 {strides = array<i32>} : memref<16x128xf32, #tpu.memory_space<vmem>>, vector<16x128xf32>,
    } else {
    }
    %3 = arith.index_cast %arg0 : i32 to index
    %4 = memref.load %arg3[%3] : memref<12xi32, #tpu.memory_space<smem>>
    %c0_i32_1 = arith.constant 0 : i32
    %5 = arith.cmpi sgt, %4, %c0_i32_1 : i32
    %6 = arith.extui %5 : i1 to i32
    %c0_i32_2 = arith.constant 0 : i32
    %7 = arith.cmpi ne, %6, %c0_i32_2 : i32
    scf.if %7 {
      %c0 = arith.constant 0 : index
      %c0_3 = arith.constant 0 : index
      %8 = vector.load %arg7[%c0, %c0_3] : memref<16x128xf32, #tpu.memory_space<vmem>>, vector<16x128xf32>
      %c0_4 = arith.constant 0 : index
      %c0_5 = arith.constant 0 : index
      %9 = vector.load %arg4[%c0_4, %c0_5] : memref<16x128xf32, #tpu.memory_space<vmem>>, vector<16x128xf32>
      %c0_6 = arith.constant 0 : index
      %c0_7 = arith.constant 0 : index
      %c0_8 = arith.constant 0 : index
      %10 = vector.load %arg5[%c0_6, %c0_7, %c0_8] : memref<1x128x512xf32, #tpu.memory_space<vmem>>, vector<1x128x512xf32>
      %11 = vector.shape_cast %10 : vector<1x128x512xf32> to vector<128x512xf32>
      %cst = arith.constant dense<0.000000e+00> : vector<16x512xf32>
      %12 = tpu.matmul %9, %11, %cst {dimension_numbers = #tpu.dot_dimension_numbers<[1], [0], [0], [1], [0, 0, 1, 1], [], []>} : vector<16x128xf32>, vector<128x512xf32>, vector<16x512xf32> -> vector<16x512xf32>
      %13 = vector.extract_strided_slice %12 {offsets = [0, 0], sizes = [16, 256], strides = [1, 1]} : vector<16x512xf32> to vector<16x256xf32>
      %14 = arith.negf %13 : vector<16x256xf32>
      %15 = math.exp %14 : vector<16x256xf32>
      %cst_9 = arith.constant 1.000000e+00 : f32
      %16 = vector.broadcast %cst_9 : f32 to vector<16x256xf32>
      %17 = arith.addf %16, %15 : vector<16x256xf32>
      %18 = arith.divf %16, %17 : vector<16x256xf32>
      %19 = arith.mulf %13, %18 : vector<16x256xf32>
      %20 = vector.extract_strided_slice %12 {offsets = [0, 256], sizes = [16, 256], strides = [1, 1]} : vector<16x512xf32> to vector<16x256xf32>
      %21 = arith.mulf %19, %20 : vector<16x256xf32>
      %c0_10 = arith.constant 0 : index
      %c0_11 = arith.constant 0 : index
      %c0_12 = arith.constant 0 : index
      %22 = vector.load %arg6[%c0_10, %c0_11, %c0_12] : memref<1x256x128xf32, #tpu.memory_space<vmem>>, vector<1x256x128xf32>
      %23 = vector.shape_cast %22 : vector<1x256x128xf32> to vector<256x128xf32>
      %cst_13 = arith.constant dense<0.000000e+00> : vector<16x128xf32>
      %24 = tpu.matmul %21, %23, %cst_13 {dimension_numbers = #tpu.dot_dimension_numbers<[1], [0], [0], [1], [0, 0, 1, 1], [], []>} : vector<16x256xf32>, vector<256x128xf32>, vector<16x128xf32> -> vector<16x128xf32>
      %25 = arith.addf %8, %24 : vector<16x128xf32>
      %c0_14 = arith.constant 0 : index
      %c0_15 = arith.constant 0 : index
      %26 = vector.load %arg7[%c0_14, %c0_15] : memref<16x128xf32, #tpu.memory_space<vmem>>, vector<16x128xf32>
      tpu.vector_store %arg7[%c0_14, %c0_15], %25 {strides = array<i32>} : memref<16x128xf32, #tpu.memory_space<vmem>>, vector<16x128xf32>,
    } else {
    }
    return
  }
  func.func @transform_0(%arg0: i32, %arg1: i32, %arg2: memref<12xi32, #tpu.memory_space<smem>>, %arg3: memref<12xi32, #tpu.memory_space<smem>>) -> (i32, i32) {
    %c0_i32 = arith.constant 0 : i32
    %c0_i32_0 = arith.constant 0 : i32
    return %arg0, %c0_i32 : i32, i32
  }
  func.func @transform_1(%arg0: i32, %arg1: i32, %arg2: memref<12xi32, #tpu.memory_space<smem>>, %arg3: memref<12xi32, #tpu.memory_space<smem>>) -> (i32, i32, i32) {
    %0 = arith.index_cast %arg0 : i32 to index
    %1 = memref.load %arg2[%0] : memref<12xi32, #tpu.memory_space<smem>>
    %c0_i32 = arith.constant 0 : i32
    %c0_i32_0 = arith.constant 0 : i32
    return %1, %c0_i32, %arg1 : i32, i32, i32
  }
  func.func @transform_2(%arg0: i32, %arg1: i32, %arg2: memref<12xi32, #tpu.memory_space<smem>>, %arg3: memref<12xi32, #tpu.memory_space<smem>>) -> (i32, i32, i32) {
    %0 = arith.index_cast %arg0 : i32 to index
    %1 = memref.load %arg2[%0] : memref<12xi32, #tpu.memory_space<smem>>
    %c0_i32 = arith.constant 0 : i32
    %c0_i32_0 = arith.constant 0 : i32
    return %1, %arg1, %c0_i32 : i32, i32, i32
  }
  func.func @transform_3(%arg0: i32, %arg1: i32, %arg2: memref<12xi32, #tpu.memory_space<smem>>, %arg3: memref<12xi32, #tpu.memory_space<smem>>) -> (i32, i32) {
    %c0_i32 = arith.constant 0 : i32
    %c0_i32_0 = arith.constant 0 : i32
    return %arg0, %c0_i32 : i32, i32
  }
}

</mosaic_0001>

<bundles_post_ra>
// kernel: tpu_custom_call.1
= control target key start
LH: loop header
LB: loop body
LE: loop exit
PB: predicated region body
PF: predicated region fallthrough
CT: control target
= control target key end

     0   :  { %s1984_s0 = inlined_call_operand.hbm [shape: s32[12], index: 0, kind: input, shape index: {}]   ;;  %s1985_s2 = inlined_call_operand.hbm [shape: f32[192,128], index: 2, kind: input, shape index: {}]   ;;  %s1986_s3 = inlined_call_operand.hbm [shape: f32[8,128,512], index: 3, kind: input, shape index: {}]   ;;  %s1987_s4 = inlined_call_operand.hbm [shape: f32[8,256,128], index: 4, kind: input, shape index: {}]   ;;  %s1988_s5 = inlined_call_operand.hbm [shape: f32[192,128], index: 5, kind: output, shape index: {}]   ;;  %s1989_s1 = inlined_call_operand.hbm [shape: s32[12], index: 1, kind: input, shape index: {}]  }
   0x1   :  { %2003 = sst [smem:[#allocation26_spill]] %s1986_s3  ;;  %s1162_s20 = scalar_lea.hbm %s1984_s0, 16 }
   0x2   :  { %2004 = sst [smem:[#allocation27_spill]] %s1988_s5  ;;  %p1163_p0 = scmp.ne.s32.totalorder %s1984_s0, %s1162_s20 }
   0x3   :  { %p1166_p1 = scmp.lt.u32.totalorder %s1162_s20, %s1984_s0 }
   0x5   :  { %p1168_p2 = pnand %p1166_p1, %p1163_p0 }
   0x7   :  { %1171 = shalt.err (!%p1168_p2)  }
   0x8   :  { %s1414_s25 = smov [#allocation3]   ;;  %s1172_s30 = scalar_lea.hbm %s1989_s1, 16 }
   0x9   :  { %11 = dma.hbm_to_smem %s1984_s0, 16, %s1414_s25, [#allocation2] }
   0xa   :  { %p1173_p3 = scmp.ne.s32.totalorder %s1989_s1, %s1172_s30  ;;  %p1176_p4 = scmp.lt.u32.totalorder %s1172_s30, %s1989_s1 }
   0xc   :  { %p1178_p5 = pnand %p1176_p4, %p1173_p3 }
   0xe   :  { %1181 = shalt.err (!%p1178_p5)  }
   0xf   :  { %s1415_s10 = smov [#allocation4]  }
  0x10   :  { %13 = dma.hbm_to_smem %s1989_s1, 16, %s1415_s10, [#allocation2] }
  0x11   :  { %1348 = dma.done.wait [#allocation2], 32 }
  0x12   :  { %1349 = vsyncadd [#allocation2], 4294967264 }
  0x13   :  { %15 = sfence }
  0x14   :  { %16 = vsyncpa [#allocation6], 0 }
  0x15   :  { %18 = vsyncpa [#allocation6 + $0x1], 0 }
  0x16   :  { %19 = vsyncpa [#allocation9], 0 }
  0x17   :  { %21 = vsyncpa [#allocation9 + $0x1], 0 }
  0x18   :  { %22 = vsyncpa [#allocation7], 0 }
  0x19   :  { %24 = vsyncpa [#allocation7 + $0x1], 0  ;;  %s1482_s0 = smov 0   ;;  %s1484_s13 = smov 0  }
  0x1a   :  { %s1486_s14 = smov 0   ;;  %s1488_s15 = smov 0  }
  0x1b   :  { %s1490_s16 = smov 0   ;;  %s1492_s1 = smov 0  }
  0x1c   :  { %s1494_s17 = smov 0   ;;  %s1496_s18 = smov 0  }
  0x1d   :  { %s1498_s19 = smov 0   ;;  %s1500_s20 = smov 0  }
  0x1e   :  { %s1502_s21 = smov 0   ;;  %s1504_s22 = smov 0  }
  0x1f LB: > { %2005 = sst [smem:[#allocation21_spill]] %s1388_s1  ;;  %s1541_s23 = sadd.s32 4294967295, %s1412_s22   ;;  %s1412_s22 = sphi %s1504_s22, %s30_s22   ;;  %s1408_s21 = sphi %s1502_s21, %s2050_s21   ;;  %s1404_s20 = sphi %s1500_s20, %s2049_s20   ;;  %s1400_s19 = sphi %s1498_s19, %s2041_s19   ;;  %s1396_s18 = sphi %s1496_s18, %s2048_s18   ;;  %s1392_s17 = sphi %s1494_s17, %s2047_s17   ;;  %s1388_s1 = sphi %s1492_s1, %s2039_s1   ;;  %s1384_s16 = sphi %s1490_s16, %s2046_s16   ;;  %s1380_s15 = sphi %s1488_s15, %s2045_s15   ;;  %s1376_s14 = sphi %s1486_s14, %s2044_s14   ;;  %s1372_s13 = sphi %s1484_s13, %s2043_s13   ;;  %s1368_s0 = sphi %s1482_s0, %s2042_s0  }
  0x20   : > { %2006 = sst [smem:[#allocation22_spill]] %s1400_s19  ;;  %s42_s24 = sadd.s32 1, %s1408_s21 }
  0x21   : > { %p44_p6 = scmp.ge.s32.totalorder %s42_s24, 12  ;;  %p1993_p7 = scmp.eq.s32.totalorder %s1412_s22, 0 }
  0x22   : > { %p1992_p8 = scmp.eq.s32.totalorder %s1541_s23, 0  ;;  %s72_s25 = sld [smem:[#allocation3 + %s1408_s21]] }
  0x23   : > { %s2052_s24 = smov (%p44_p6, %s42_s24), 0  ;;  %s79_s26 = sadd.s32 1, %s1388_s1 }
  0x24   : > { %p86_p9 = scmp.ne.s32.totalorder %s1388_s1, %s1384_s16  ;;  %s73_s27 = sld [smem:[#allocation3 + %s2052_s24]] }
  0x25   : > { %p92_p10 = scmp.ne.s32.totalorder %s1384_s16, %s1380_s15  ;;  %p1991_p13 = scmp.lt.s32.totalorder %s1412_s22, 12 }
  0x26   : > { %p1556_p11 = por %p86_p9, %p1993_p7  ;;  %s193_s30 = sand.u32 1, %s1412_s22  }
  0x27   : > { %p1562_p12 = por %p92_p10, %p1992_p8  ;;  %s195_s6 = sand.u32 1, %s1388_s1  }
  0x28   : > { %s833_s7 = sshll.u32 %s195_s6, 9  ;;  %p1573_p0 = pnand %p1991_p13, %p1556_p11 }
  0x29   : > { %s2008_s29 = scalar_select %p1562_p12, 1, 0 }
  0x2a   : > { %s74_s9 = ssub.s32 %s72_s25, %s73_s27  ;;  %s197_s10 = scalar_lea.vmem [#allocation8], %s833_s7 }
  0x2b   : > { %s207_s11 = sshll.u32 %s197_s10, 4  ;;  %p77_p1 = scmp.eq.s32.totalorder %s74_s9, 0  ;;  %s1577_s11 = int_to_ptr.vmem [resolvable:$true] %s207_s11 }
  0x2c   : > { %s1009_s12 = scalar_select %p1556_p11, [#allocation3], [#allocation12] }
  0x2d   : > { %s1582_s15 = scalar_select %p77_p1, %s1388_s1, %s79_s26  }
  0x2e   : > { %s1010_s6 = scalar_select %p1556_p11, %s1408_s21, 0 }
  0x2f   : > { %2010 = sst [smem:[#allocation23_spill]] %s1582_s15  ;;  %s2054_s12 = smov (!%p1991_p13, %s1009_s12), [#allocation14] }
  0x30   : > { %s2056_s6 = smov (!%p1991_p13, %s1010_s6), 0  ;;  %p839_p2 = scmp.ge.s32.totalorder %s1412_s22, 1 }
  0x31   : > { %s198_s5 = sld [smem:[%s2054_s12 + %s2056_s6]]  ;;  %p239_p3 = scmp.lt.s32.totalorder %s1412_s22, 13 }
  0x32   : > { %s2012_s3 = sld [smem:[#allocation26_spill]]  ;;  %s827_s26 = sadd.s32 4294967294, %s1412_s22  }
  0x33   : > { %p1593_p4 = pnand %p839_p2, %p239_p3  ;;  %s1603_s28 = scalar_lea.sflag [#allocation9], %s193_s30 }
  0x34   : > { %p1184_p6 = pneg %p1573_p0 }
  0x37   : > { %s855_s27 = sshll.u32 %s198_s5, 13 }
  0x38   : > { %s1600_s10 = scalar_lea.hbm %s2012_s3, %s855_s27  ;;  %s1187_s27 = scalar_lea.hbm %s2012_s3, 65536 }
  0x39   : > { %s1182_s12 = scalar_lea.hbm %s1600_s10, 8192  ;;  %p1188_p11 = scmp.lt.u32.totalorder %s1600_s10, %s2012_s3 }
  0x3a   : > { %p1183_p5 = scmp.ne.s32.totalorder %s1600_s10, %s1182_s12  ;;  %p1189_p1 = scmp.lt.u32.totalorder %s1187_s27, %s1182_s12 }
  0x3b   : > { %p1191_p3 = scmp.lt.u32.totalorder %s1182_s12, %s1600_s10 }
  0x3c   : > { %p1185_p9 = pnand %p1184_p6, %p1183_p5  ;;  %p1190_p2 = por %p1189_p1, %p1188_p11 }
  0x3e   : > { %p1186_p10 = pneg %p1185_p9  ;;  %p1192_p13 = por %p1191_p3, %p1190_p2 }
  0x40   : > { %p1193_p8 = pnand %p1192_p13, %p1186_p10 }
  0x42   : > { %1196 = shalt.err (!%p1193_p8)
}
  0x43   : > { %s1197_s30 = scalar_lea.vmem %s1577_s11, 8192  ;;  %s1416_s5 = smov [#allocation8]  }
  0x44   : > { %p1198_p5 = scmp.ne.s32.totalorder %s1577_s11, %s1197_s30  ;;  %s1202_s6 = sshll.u32 %s1416_s5, 4  ;;  %s1203_s6 = int_to_ptr.vmem [resolvable:$false] %s1202_s6 }
  0x45   : > { %s1204_s7 = scalar_lea.vmem %s1203_s6, 16384  ;;  %p1205_p12 = scmp.lt.s32.totalorder %s1577_s11, %s1203_s6 }
  0x46   : > { %p1200_p9 = pnand %p1198_p5, %p1184_p6  ;;  %p1206_p11 = scmp.lt.s32.totalorder %s1204_s7, %s1197_s30 }
  0x48   : > { %p1201_p7 = pneg %p1200_p9  ;;  %p1207_p1 = por %p1206_p11, %p1205_p12 }
  0x4a   : > { %p1208_p2 = pnand %p1207_p1, %p1201_p7 }
  0x4c   : > { %1211 = shalt.err (!%p1208_p2)
}
  0x4d   : > { %s1417_s12 = smov 512   ;;  %s1418_s27 = smov 32  }
  0x4e   : > { %1028 = dma.hbm_to_vmem [thread:$0]  (!%p1573_p0), %s1600_s10, 8192, %s1577_s11, %s1603_s28, %s1417_s12, %s1417_s12, %s1418_s27  }
  0x4f   : > { %s46_s9 = ssub.s32 %s1408_s21, %s2052_s24  ;;  %s49_s30 = sadd.s32 1, %s1400_s19 }
  0x50   : > { %p47_p7 = scmp.eq.s32.totalorder %s46_s9, 0  ;;  %p56_p8 = scmp.ne.s32.totalorder %s1400_s19, %s1396_s18 }
  0x51   : > { %p62_p12 = scmp.ne.s32.totalorder %s1396_s18, %s1392_s17  ;;  %p146_p13 = scmp.eq.s32.totalorder %s1541_s23, 11 }
  0x52   : > { %s1640_s5 = scalar_select %p47_p7, %s1400_s19, %s49_s30  }
  0x53   : > { %p2014_p6 = scmp.eq.s32.totalorder %s1412_s22, 0  ;;  %p2015_p3 = scmp.eq.s32.totalorder %s1541_s23, 0 }
  0x54   : > { %2013 = sst [smem:[#allocation24_spill]] %s1640_s5  ;;  %p1650_p9 = por %p146_p13, %p56_p8 }
  0x55   : > { %p58_p10 = por %p2014_p6, %p56_p8  ;;  %p1646_p5 = por %p2015_p3, %p62_p12 }
  0x56   : > { %s2017_s7 = scalar_select %p1650_p9, 1, 0 }
  0x57   : > { %s2016_s6 = scalar_select %p1646_p5, 1, 0 }
  0x58   : > { %p152_p0 = scmp.eq.s32.totalorder %s827_s26, 11  ;;  %s172_s8 = sand.u32 1, %s1400_s19  }
  0x59   : > { %s854_s11 = sshll.u32 %s1408_s21, 8  ;;  %s830_s12 = sshll.u32 %s172_s8, 4 }
  0x5a   : > { %p1658_p11 = por %p152_p0, %p62_p12  ;;  %s1665_s30 = scalar_lea.hbm %s1985_s2, %s854_s11 }
  0x5b   : > { %p2020_p1 = scmp.lt.s32.totalorder %s1412_s22, 12  ;;  %s176_s26 = scalar_lea.vmem [#allocation5], %s830_s12 }
  0x5c   : > { %s2018_s10 = scalar_select %p1658_p11, 1, 0 }
  0x5d   : > { %p1669_p2 = pnand %p2020_p1, %p58_p10  ;;  %s183_s5 = sshll.u32 %s176_s26, 4  ;;  %s1673_s5 = int_to_ptr.vmem [resolvable:$true] %s183_s5 }
  0x5e   : > { %2019 = sst [smem:[#allocation25_spill]] %s2018_s10  ;;  %s1675_s19 = scalar_lea.sflag [#allocation6], %s172_s8 }
  0x5f   : > { %s1212_s27 = scalar_lea.hbm %s1665_s30, 256  ;;  %p1214_p8 = pneg %p1669_p2 }
  0x60   : > { %p1213_p7 = scmp.ne.s32.totalorder %s1665_s30, %s1212_s27  ;;  %s1217_s15 = scalar_lea.hbm %s1985_s2, 3072 }
  0x61   : > { %p1218_p6 = scmp.lt.u32.totalorder %s1665_s30, %s1985_s2  ;;  %p1219_p10 = scmp.lt.u32.totalorder %s1217_s15, %s1212_s27 }
  0x62   : > { %p1215_p12 = pnand %p1214_p8, %p1213_p7  ;;  %p1221_p0 = scmp.lt.u32.totalorder %s1212_s27, %s1665_s30 }
  0x63   : > { %p1220_p3 = por %p1219_p10, %p1218_p6 }
  0x64   : > { %p1216_p13 = pneg %p1215_p12 }
  0x65   : > { %p1222_p1 = por %p1221_p0, %p1220_p3 }
  0x67   : > { %p1223_p11 = pnand %p1222_p1, %p1216_p13 }
  0x69   : > { %1226 = shalt.err (!%p1223_p11)
}
  0x6a   : > { %s1227_s8 = scalar_lea.vmem %s1673_s5, 256  ;;  %s1419_s12 = smov [#allocation5]  }
  0x6b   : > { %p1228_p7 = scmp.ne.s32.totalorder %s1673_s5, %s1227_s8  ;;  %s1232_s26 = sshll.u32 %s1419_s12, 4  ;;  %s1233_s26 = int_to_ptr.vmem [resolvable:$false] %s1232_s26 }
  0x6c   : > { %s1234_s1 = scalar_lea.vmem %s1233_s26, 512  ;;  %p1235_p5 = scmp.lt.s32.totalorder %s1673_s5, %s1233_s26 }
  0x6d   : > { %p1230_p12 = pnand %p1228_p7, %p1214_p8  ;;  %p1236_p6 = scmp.lt.s32.totalorder %s1234_s1, %s1227_s8 }
  0x6f   : > { %p1231_p9 = pneg %p1230_p12  ;;  %p1237_p10 = por %p1236_p6, %p1235_p5 }
  0x71   : > { %p1238_p3 = pnand %p1237_p10, %p1231_p9 }
  0x73   : > { %1241 = shalt.err (!%p1238_p3)
}
  0x74   : > { %s2000_s15 = smov 128   ;;  %s2001_s10 = smov 8  }
  0x75   : > { %1023 = dma.hbm_to_vmem [thread:$0]  (!%p1669_p2), %s1665_s30, 256, %s1673_s5, %s1675_s19, %s2000_s15, %s2000_s15, %s2001_s10  }
  0x76   : > { %s102_s27 = sld [smem:[#allocation3 + %s1408_s21]]  ;;  %p116_p5 = scmp.ne.s32.totalorder %s1376_s14, %s1372_s13 }
  0x77   : > { %s103_s11 = sld [smem:[#allocation3 + %s2052_s24]]  ;;  %p122_p9 = scmp.ne.s32.totalorder %s1372_s13, %s1368_s0 }
  0x78   : > { %p2022_p11 = scmp.eq.s32.totalorder %s1541_s23, 0  ;;  %s219_s8 = sand.u32 1, %s1376_s14  }
  0x79   : > { %p2024_p13 = scmp.eq.s32.totalorder %s1412_s22, 0  ;;  %s109_s3 = sadd.s32 1, %s1376_s14 }
  0x7a   : > { %p1714_p8 = por %p122_p9, %p2022_p11  ;;  %s836_s26 = sshll.u32 %s219_s8, 8 }
  0x7b   : > { %p118_p0 = por %p116_p5, %p2024_p13  ;;  %p2025_p7 = scmp.lt.s32.totalorder %s1412_s22, 12 }
  0x7c   : > { %s2023_s9 = scalar_select %p1714_p8, 1, 0 }
  0x7d   : > { %s104_s12 = ssub.s32 %s102_s27, %s103_s11  ;;  %p1724_p2 = pnand %p2025_p7, %p118_p0 }
  0x7e   : > { %p107_p1 = scmp.eq.s32.totalorder %s104_s12, 0  ;;  %p2027_p12 = pmov %p2025_p7 }
  0x7f   : > { %s1012_s0 = scalar_select %p118_p0, [#allocation3], [#allocation13] }
  0x80   : > { %s1729_s5 = scalar_select %p107_p1, %s1376_s14, %s109_s3  }
  0x81   : > { %s1013_s30 = scalar_select %p118_p0, %s1408_s21, 0 }
  0x82   : > { %s2058_s0 = smov (!%p2027_p12, %s1012_s0), [#allocation15]  ;;  %p2028_p6 = pmov %p2025_p7 }
  0x83   : > { %s221_s15 = scalar_lea.vmem [#allocation10], %s836_s26  ;;  %p1244_p3 = pneg %p1724_p2 }
  0x84   : > { %s2060_s30 = smov (!%p2028_p6, %s1013_s30), 0  ;;  %s231_s27 = sshll.u32 %s221_s15, 4  ;;  %s1736_s27 = int_to_ptr.vmem [resolvable:$true] %s231_s27 }
  0x85   : > { %s222_s1 = sld [smem:[%s2058_s0 + %s2060_s30]]  ;;  %s1247_s0 = scalar_lea.hbm %s1987_s4, 32768 }
  0x8b   : > { %s856_s11 = sshll.u32 %s222_s1, 12 }
  0x8c   : > { %s1741_s10 = scalar_lea.hbm %s1987_s4, %s856_s11 }
  0x8d   : > { %s1242_s3 = scalar_lea.hbm %s1741_s10, 4096  ;;  %p1248_p11 = scmp.lt.u32.totalorder %s1741_s10, %s1987_s4 }
  0x8e   : > { %p1243_p10 = scmp.ne.s32.totalorder %s1741_s10, %s1242_s3  ;;  %p1249_p13 = scmp.lt.u32.totalorder %s1247_s0, %s1242_s3 }
  0x8f   : > { %p1251_p1 = scmp.lt.u32.totalorder %s1242_s3, %s1741_s10 }
  0x90   : > { %p1245_p5 = pnand %p1244_p3, %p1243_p10  ;;  %p1250_p0 = por %p1249_p13, %p1248_p11 }
  0x92   : > { %p1246_p9 = pneg %p1245_p5  ;;  %p1252_p7 = por %p1251_p1, %p1250_p0 }
  0x94   : > { %p1253_p12 = pnand %p1252_p7, %p1246_p9 }
  0x96   : > { %1256 = shalt.err (!%p1253_p12)
}
  0x97   : > { %s1257_s11 = scalar_lea.vmem %s1736_s27, 4096  ;;  %s1422_s8 = smov [#allocation10]  }
  0x98   : > { %p1258_p6 = scmp.ne.s32.totalorder %s1736_s27, %s1257_s11  ;;  %s1262_s12 = sshll.u32 %s1422_s8, 4  ;;  %s1263_s12 = int_to_ptr.vmem [resolvable:$false] %s1262_s12 }
  0x99   : > { %s1264_s15 = scalar_lea.vmem %s1263_s12, 8192  ;;  %p1265_p8 = scmp.lt.s32.totalorder %s1736_s27, %s1263_s12 }
  0x9a   : > { %p1260_p10 = pnand %p1258_p6, %p1244_p3  ;;  %p1266_p11 = scmp.lt.s32.totalorder %s1264_s15, %s1257_s11 }
  0x9c   : > { %p1261_p5 = pneg %p1260_p10  ;;  %p1267_p13 = por %p1266_p11, %p1265_p8 }
  0x9e   : > { %p1268_p0 = pnand %p1267_p13, %p1261_p5 }
  0xa0   : > { %1271 = shalt.err (!%p1268_p0)
}
  0xa1   : > { %s2029_s3 = smov 8   ;;  %s2030_s26 = smov 128  }
  0xa2   : > { %1033 = dma.hbm_to_vmem [thread:$0]  (!%p1724_p2), %s1741_s10, 4096, %s1736_s27, %s1603_s28, %s2030_s26, %s2030_s26, %s2029_s3  }
  0xa3   : > { %243 = sbr.rel (%p1593_p4) target bundleno = 716 (0x2cc), region = 32  ;;  %s1775_s0 = sand.u32 (!%p1593_p4), 1, %s1396_s18  }
  0xa4   : > { %s840_s30 = sshll.u32 (!%p1593_p4), %s1775_s0, 4  ;;  %s246_s1 = scalar_lea.sflag (!%p1593_p4), [#allocation6], %s1775_s0 }
  0xa5   : > { %s1779_s11 = scalar_lea.vmem (!%p1593_p4), [#allocation5], %s840_s30  ;;  %p2031_p8 = scmp.ne.s32.totalorder (!%p1593_p4), %s2016_s6, 0 }
  0xaa   : > { %1351 = dma.done.wait (%p2031_p8), %s246_s1, 256  }
  0xab   : > { %1353 = vsyncadd (%p2031_p8), %s246_s1, 4294967040  ;;  %s254_s25 = sand.u32 1, %s1541_s23   ;;  %s256_s28 = sand.u32 1, %s1384_s16  }
  0xac   : > { %s841_s10 = sshll.u32 %s256_s28, 9  ;;  %s255_s19 = scalar_lea.sflag [#allocation9], %s254_s25 }
  0xad   : > { %s1787_s27 = scalar_lea.vmem [#allocation8], %s841_s10  ;;  %p2032_p4 = scmp.ne.s32.totalorder %s2008_s29, 0 }
  0xaf   : > { %1355 = dma.done.wait (%p2032_p4), %s255_s19, 8192  }
  0xb0   : > { %1357 = vsyncadd (%p2032_p4), %s255_s19, 4294959104  ;;  %s265_s8 = sand.u32 1, %s1372_s13   ;;  %p2033_p2 = scmp.ne.s32.totalorder %s2023_s9, 0 }
  0xb1   : > { %s842_s12 = sshll.u32 %s265_s8, 8 }
  0xb2   : > { %s1794_s6 = scalar_lea.vmem [#allocation10], %s842_s12 }
  0xb3   : > { %1359 = dma.done.wait (%p2033_p2), %s255_s19, 4096  }
  0xb4   : > { %1361 = vsyncadd (%p2033_p2), %s255_s19, 4294963200  ;;  %s312_s23 = sld [smem:[#allocation4 + %s1404_s20]]  ;;  %s1801_s15 = scalar_lea.vmem [#allocation11], %s840_s30  ;;  %v1423_v0 = vmov 0.0  }
  0xb5   : > { %310 = vst [vmem:[%s1801_s15] sm:$0xff] %v1423_v0  ;;  %311 = vst [vmem:[%s1801_s15 + $0x8] sm:$0xff] %v1423_v0 }
  0xba   : > { %p844_p3 = scmp.le.s32.totalorder %s312_s23, 0 }
  0xbb   : > { %v322_v1 = vld [vmem:[%s1787_s27 + $0x8] sm:$0xff] (!%p844_p3)  ;;  %v321_v3 = vld [vmem:[%s1787_s27] sm:$0xff] (!%p844_p3)  ;;  %v1424_v8 = vmov (!%p844_p3), 0.0   ;;  %v324_v25 = vld [vmem:[%s1787_s27 + $0x18] sm:$0xff] (!%p844_p3) }
  0xbc   : > { %316 = sbr.rel (%p844_p3) target bundleno = 689 (0x2b1), region = 52  ;;  %v326_v2 = vld [vmem:[%s1787_s27 + $0x28] sm:$0xff] (!%p844_p3)  ;;  %v325_v5 = vld [vmem:[%s1787_s27 + $0x20] sm:$0xff] (!%p844_p3)  ;;  %449 = vmatprep.mubr.f32.mxu0 (!%p844_p3), %v1424_v8  ;;  %526 = vmatprep.mubr.f32.mxu1 (!%p844_p3), %v1424_v8  ;;  %v328_v26 = vld [vmem:[%s1787_s27 + $0x38] sm:$0xff] (!%p844_p3) }
  0xbd   : > { %v896_v4 = vpack.c.bf16 (!%p844_p3), %v326_v2, %v322_v1  ;;  %v330_v6 = vld [vmem:[%s1787_s27 + $0x48] sm:$0xff] (!%p844_p3)  ;;  %v898_v9 = vpack.c.bf16 (!%p844_p3), %v325_v5, %v321_v3  ;;  %v329_v11 = vld [vmem:[%s1787_s27 + $0x40] sm:$0xff] (!%p844_p3)  ;;  %v928_v29 = vpack.c.bf16 (!%p844_p3), %v328_v26, %v324_v25  ;;  %v323_v30 = vld [vmem:[%s1787_s27 + $0x10] sm:$0xff] (!%p844_p3) }
  0xbe   : > { %v334_v7 = vld [vmem:[%s1787_s27 + $0x68] sm:$0xff] (!%p844_p3)  ;;  %v333_v12 = vld [vmem:[%s1787_s27 + $0x60] sm:$0xff] (!%p844_p3)  ;;  %v327_v32 = vld [vmem:[%s1787_s27 + $0x30] sm:$0xff] (!%p844_p3) }
  0xbf   : > { %v900_v10 = vpack.c.bf16 (!%p844_p3), %v334_v7, %v330_v6  ;;  %v338_v13 = vld [vmem:[%s1787_s27 + $0x88] sm:$0xff] (!%p844_p3)  ;;  %897 = vmatprep.subr.bf16.mxu0 (!%p844_p3), %v896_v4  ;;  %v902_v15 = vpack.c.bf16 (!%p844_p3), %v333_v12, %v329_v11  ;;  %v337_v17 = vld [vmem:[%s1787_s27 + $0x80] sm:$0xff] (!%p844_p3)  ;;  %929 = vmatprep.subr.bf16.mxu1 (!%p844_p3), %v928_v29  ;;  %v930_v35 = vpack.c.bf16 (!%p844_p3), %v327_v32, %v323_v30  ;;  %v332_v36 = vld [vmem:[%s1787_s27 + $0x58] sm:$0xff] (!%p844_p3) }
  0xc0   : > { %v342_v14 = vld [vmem:[%s1787_s27 + $0xa8] sm:$0xff] (!%p844_p3)  ;;  %899 = vmatpush1.bf16.msra.mxu0 (!%p844_p3), %v898_v9  ;;  %v341_v18 = vld [vmem:[%s1787_s27 + $0xa0] sm:$0xff] (!%p844_p3)  ;;  %v336_v37 = vld [vmem:[%s1787_s27 + $0x78] sm:$0xff] (!%p844_p3) }
  0xc1   : > { %901 = vmatprep.subr.bf16.mxu0 (!%p844_p3), %v900_v10  ;;  %v904_v16 = vpack.c.bf16 (!%p844_p3), %v342_v14, %v338_v13  ;;  %v346_v19 = vld [vmem:[%s1787_s27 + $0xc8] sm:$0xff] (!%p844_p3)  ;;  %v906_v21 = vpack.c.bf16 (!%p844_p3), %v341_v18, %v337_v17  ;;  %v345_v22 = vld [vmem:[%s1787_s27 + $0xc0] sm:$0xff] (!%p844_p3)  ;;  %v932_v39 = vpack.c.bf16 (!%p844_p3), %v336_v37, %v332_v36  ;;  %v331_v40 = vld [vmem:[%s1787_s27 + $0x50] sm:$0xff] (!%p844_p3)  ;;  %931 = vmatpush1.bf16.msra.mxu1 (!%p844_p3), %v930_v35 }
  0xc2   : > { %v350_v20 = vld [vmem:[%s1787_s27 + $0xe8] sm:$0xff] (!%p844_p3)  ;;  %v349_v24 = vld [vmem:[%s1787_s27 + $0xe0] sm:$0xff] (!%p844_p3)  ;;  %v335_v41 = vld [vmem:[%s1787_s27 + $0x70] sm:$0xff] (!%p844_p3) }
  0xc3   : > { %v908_v23 = vpack.c.bf16 %v350_v20, %v346_v19  ;;  %v354_v27 = vld [vmem:[%s1787_s27 + $0x108] sm:$0xff]  ;;  %v353_v31 = vld [vmem:[%s1787_s27 + $0x100] sm:$0xff]  ;;  %v910_v33 = vpack.c.bf16 %v349_v24, %v345_v22  ;;  %v340_v42 = vld [vmem:[%s1787_s27 + $0x98] sm:$0xff]  ;;  %v934_v45 = vpack.c.bf16 %v335_v41, %v331_v40  ;;  %933 = vmatprep.subr.bf16.mxu1 %v932_v39 }
  0xc4   : > { %903 = vmatpush1.bf16.msra.mxu0 %v902_v15  ;;  %v358_v28 = vld [vmem:[%s1787_s27 + $0x128] sm:$0xff]  ;;  %v357_v34 = vld [vmem:[%s1787_s27 + $0x120] sm:$0xff]  ;;  %v344_v46 = vld [vmem:[%s1787_s27 + $0xb8] sm:$0xff] }
  0xc5   : > { %905 = vmatprep.subr.bf16.mxu0 %v904_v16  ;;  %v912_v38 = vpack.c.bf16 %v358_v28, %v354_v27  ;;  %v362_v43 = vld [vmem:[%s1787_s27 + $0x148] sm:$0xff]  ;;  %v936_v47 = vpack.c.bf16 %v344_v46, %v340_v42  ;;  %v339_v48 = vld [vmem:[%s1787_s27 + $0x90] sm:$0xff]  ;;  %v914_v50 = vpack.c.bf16 %v357_v34, %v353_v31  ;;  %v348_v51 = vld [vmem:[%s1787_s27 + $0xd8] sm:$0xff]  ;;  %935 = vmatpush1.bf16.msra.mxu1 %v934_v45 }
  0xc6   : > { %v366_v44 = vld [vmem:[%s1787_s27 + $0x168] sm:$0xff]  ;;  %v343_v49 = vld [vmem:[%s1787_s27 + $0xb0] sm:$0xff]  ;;  %v352_v52 = vld [vmem:[%s1787_s27 + $0xf8] sm:$0xff] }
  0xc7   : > { %v916_v53 = vpack.c.bf16 %v366_v44, %v362_v43  ;;  %v361_v54 = vld [vmem:[%s1787_s27 + $0x140] sm:$0xff]  ;;  %v370_v56 = vld [vmem:[%s1787_s27 + $0x188] sm:$0xff]  ;;  %v938_v58 = vpack.c.bf16 %v343_v49, %v339_v48  ;;  %937 = vmatprep.subr.bf16.mxu1 %v936_v47  ;;  %v940_v59 = vpack.c.bf16 %v352_v52, %v348_v51  ;;  %v347_v60 = vld [vmem:[%s1787_s27 + $0xd0] sm:$0xff] }
  0xc8   : > { %907 = vmatpush1.bf16.msra.mxu0 %v906_v21  ;;  %v365_v55 = vld [vmem:[%s1787_s27 + $0x160] sm:$0xff]  ;;  %v374_v57 = vld [vmem:[%s1787_s27 + $0x1a8] sm:$0xff]  ;;  %v351_v61 = vld [vmem:[%s1787_s27 + $0xf0] sm:$0xff] }
  0xc9   : > { %909 = vmatprep.subr.bf16.mxu0 %v908_v23  ;;  %v918_v62 = vpack.c.bf16 %v365_v55, %v361_v54  ;;  %v356_v63 = vld [vmem:[%s1787_s27 + $0x118] sm:$0xff]  ;;  %v920_v1 = vpack.c.bf16 %v374_v57, %v370_v56  ;;  %v369_v2 = vld [vmem:[%s1787_s27 + $0x180] sm:$0xff]  ;;  %v378_v4 = vld [vmem:[%s1787_s27 + $0x1c8] sm:$0xff]  ;;  %939 = vmatpush1.bf16.msra.mxu1 %v938_v58  ;;  %v942_v6 = vpack.c.bf16 %v351_v61, %v347_v60 }
  0xca   : > { %v360_v0 = vld [vmem:[%s1787_s27 + $0x138] sm:$0xff]  ;;  %v373_v3 = vld [vmem:[%s1787_s27 + $0x1a0] sm:$0xff]  ;;  %v382_v5 = vld [vmem:[%s1787_s27 + $0x1e8] sm:$0xff]  ;;  %941 = vmatprep.subr.bf16.mxu1 %v940_v59 }
  0xcb   : > { %v944_v7 = vpack.c.bf16 %v360_v0, %v356_v63  ;;  %v355_v9 = vld [vmem:[%s1787_s27 + $0x110] sm:$0xff]  ;;  %v922_v11 = vpack.c.bf16 %v373_v3, %v369_v2  ;;  %v364_v12 = vld [vmem:[%s1787_s27 + $0x158] sm:$0xff]  ;;  %v924_v14 = vpack.c.bf16 %v382_v5, %v378_v4  ;;  %v377_v15 = vld [vmem:[%s1787_s27 + $0x1c0] sm:$0xff] }
  0xcc   : > { %911 = vmatpush1.bf16.msra.mxu0 %v910_v33  ;;  %v359_v10 = vld [vmem:[%s1787_s27 + $0x130] sm:$0xff]  ;;  %v368_v13 = vld [vmem:[%s1787_s27 + $0x178] sm:$0xff]  ;;  %v381_v16 = vld [vmem:[%s1787_s27 + $0x1e0] sm:$0xff] }
  0xcd   : > { %913 = vmatprep.subr.bf16.mxu0 %v912_v38  ;;  %943 = vmatpush1.bf16.msra.mxu1 %v942_v6  ;;  %v946_v17 = vpack.c.bf16 %v359_v10, %v355_v9  ;;  %v948_v18 = vpack.c.bf16 %v368_v13, %v364_v12  ;;  %v363_v19 = vld [vmem:[%s1787_s27 + $0x150] sm:$0xff]  ;;  %v926_v21 = vpack.c.bf16 %v381_v16, %v377_v15  ;;  %v372_v22 = vld [vmem:[%s1787_s27 + $0x198] sm:$0xff]  ;;  %v587_v37 = vld [vmem:[%s1794_s6 + $0x80] sm:$0xff] }
  0xce   : > { %945 = vmatprep.subr.bf16.mxu1 %v944_v7  ;;  %v367_v20 = vld [vmem:[%s1787_s27 + $0x170] sm:$0xff]  ;;  %v376_v23 = vld [vmem:[%s1787_s27 + $0x1b8] sm:$0xff]  ;;  %v588_v38 = vld [vmem:[%s1794_s6 + $0x88] sm:$0xff] }
  0xcf   : > { %v950_v24 = vpack.c.bf16 %v367_v20, %v363_v19  ;;  %v952_v25 = vpack.c.bf16 %v376_v23, %v372_v22  ;;  %v371_v26 = vld [vmem:[%s1787_s27 + $0x190] sm:$0xff]  ;;  %v380_v29 = vld [vmem:[%s1787_s27 + $0x1d8] sm:$0xff]  ;;  %v960_v39 = vpack.c.bf16 %v588_v38, %v587_v37  ;;  %v571_v40 = vld [vmem:[%s1794_s6] sm:$0xff] }
  0xd0   : > { %915 = vmatpush1.bf16.msra.mxu0 %v914_v50  ;;  %v375_v27 = vld [vmem:[%s1787_s27 + $0x1b0] sm:$0xff]  ;;  %v384_v30 = vld [vmem:[%s1787_s27 + $0x1f8] sm:$0xff]  ;;  %v572_v41 = vld [vmem:[%s1794_s6 + $0x8] sm:$0xff] }
  0xd1   : > { %917 = vmatprep.subr.bf16.mxu0 %v916_v53  ;;  %947 = vmatpush1.bf16.msra.mxu1 %v946_v17  ;;  %v319_v28 = vld [vmem:[%s1779_s11] sm:$0xff]  ;;  %v954_v31 = vpack.c.bf16 %v375_v27, %v371_v26  ;;  %v956_v32 = vpack.c.bf16 %v384_v30, %v380_v29  ;;  %v320_v35 = vld [vmem:[%s1779_s11 + $0x8] sm:$0xff]  ;;  %v962_v42 = vpack.c.bf16 %v572_v41, %v571_v40 }
  0xd2   : > { %949 = vmatprep.subr.bf16.mxu1 %v948_v18  ;;  %v379_v33 = vld [vmem:[%s1787_s27 + $0x1d0] sm:$0xff]  ;;  %v590_v44 = vld [vmem:[%s1794_s6 + $0x98] sm:$0xff]  ;;  %v591_v48 = vld [vmem:[%s1794_s6 + $0xa0] sm:$0xff] }
  0xd3   : > { %v383_v34 = vld [vmem:[%s1787_s27 + $0x1f0] sm:$0xff]  ;;  %v574_v46 = vld [vmem:[%s1794_s6 + $0x18] sm:$0xff]  ;;  %v592_v49 = vld [vmem:[%s1794_s6 + $0xa8] sm:$0xff] }
  0xd4   : > { %919 = vmatpush1.bf16.msra.mxu0 %v918_v62  ;;  %v958_v36 = vpack.c.bf16 %v383_v34, %v379_v33  ;;  %v589_v43 = vld [vmem:[%s1794_s6 + $0x90] sm:$0xff]  ;;  %v968_v50 = vpack.c.bf16 %v592_v49, %v591_v48  ;;  %v575_v51 = vld [vmem:[%s1794_s6 + $0x20] sm:$0xff]  ;;  %v576_v52 = vld [vmem:[%s1794_s6 + $0x28] sm:$0xff] }
  0xd5   : > { %921 = vmatprep.subr.bf16.mxu0 %v920_v1  ;;  %951 = vmatpush1.bf16.msra.mxu1 %v950_v24  ;;  %v964_v45 = vpack.c.bf16 %v590_v44, %v589_v43  ;;  %v970_v53 = vpack.c.bf16 %v576_v52, %v575_v51  ;;  %v593_v54 = vld [vmem:[%s1794_s6 + $0xb0] sm:$0xff]  ;;  %v594_v55 = vld [vmem:[%s1794_s6 + $0xb8] sm:$0xff]  ;;  %v595_v60 = vld [vmem:[%s1794_s6 + $0xc0] sm:$0xff] }
  0xd6   : > { %953 = vmatprep.subr.bf16.mxu1 %v952_v25  ;;  %v972_v56 = vpack.c.bf16 %v594_v55, %v593_v54  ;;  %v577_v57 = vld [vmem:[%s1794_s6 + $0x30] sm:$0xff]  ;;  %v578_v58 = vld [vmem:[%s1794_s6 + $0x38] sm:$0xff]  ;;  %v596_v61 = vld [vmem:[%s1794_s6 + $0xc8] sm:$0xff] }
  0xd7   : > { %v974_v59 = vpack.c.bf16 %v578_v58, %v577_v57  ;;  %v976_v62 = vpack.c.bf16 %v596_v61, %v595_v60  ;;  %v579_v63 = vld [vmem:[%s1794_s6 + $0x40] sm:$0xff]  ;;  %v580_v0 = vld [vmem:[%s1794_s6 + $0x48] sm:$0xff]  ;;  %v597_v2 = vld [vmem:[%s1794_s6 + $0xd0] sm:$0xff] }
  0xd8   : > { %923 = vmatpush1.bf16.msra.mxu0 %v922_v11  ;;  %v978_v1 = vpack.c.bf16 %v580_v0, %v579_v63  ;;  %v598_v3 = vld [vmem:[%s1794_s6 + $0xd8] sm:$0xff]  ;;  %v581_v5 = vld [vmem:[%s1794_s6 + $0x50] sm:$0xff]  ;;  %v599_v9 = vld [vmem:[%s1794_s6 + $0xe0] sm:$0xff] }
  0xd9   : > { %925 = vmatprep.subr.bf16.mxu0 %v924_v14  ;;  %955 = vmatpush1.bf16.msra.mxu1 %v954_v31  ;;  %v980_v4 = vpack.c.bf16 %v598_v3, %v597_v2  ;;  %v582_v6 = vld [vmem:[%s1794_s6 + $0x58] sm:$0xff]  ;;  %v600_v10 = vld [vmem:[%s1794_s6 + $0xe8] sm:$0xff]  ;;  %v583_v12 = vld [vmem:[%s1794_s6 + $0x60] sm:$0xff] }
  0xda   : > { %957 = vmatprep.subr.bf16.mxu1 %v956_v32  ;;  %v982_v7 = vpack.c.bf16 %v582_v6, %v581_v5  ;;  %v984_v11 = vpack.c.bf16 %v600_v10, %v599_v9  ;;  %v584_v13 = vld [vmem:[%s1794_s6 + $0x68] sm:$0xff]  ;;  %v601_v15 = vld [vmem:[%s1794_s6 + $0xf0] sm:$0xff]  ;;  %v602_v16 = vld [vmem:[%s1794_s6 + $0xf8] sm:$0xff] }
  0xdb   : > { %v986_v14 = vpack.c.bf16 %v584_v13, %v583_v12  ;;  %v988_v17 = vpack.c.bf16 %v602_v16, %v601_v15  ;;  %v585_v18 = vld [vmem:[%s1794_s6 + $0x70] sm:$0xff]  ;;  %v586_v19 = vld [vmem:[%s1794_s6 + $0x78] sm:$0xff] }
  0xdc   : > { %927 = vmatpush1.bf16.msra.mxu0 %v926_v21  ;;  %v990_v20 = vpack.c.bf16 %v586_v19, %v585_v18  ;;  %v318_v58 = vld [vmem:[%s1801_s15 + $0x8] sm:$0xff] }
  0xdd   : > { %959 = vmatpush1.bf16.msra.mxu1 %v958_v36  ;;  %961 = vmatprep.subr.bf16.mxu0 %v960_v39 }
  0xde   : > { %992 = vmatprep.subr.bf16.mxu1 %v960_v39 }
  0xdf   : > { %450 = vmatmul.mubr.f32.vlgmr.msra.gmra.mrb[0].mxu0 %v319_v28 }
  0xe0   : > { %455 = vmatprep.mubr.f32.mxu0 %v1424_v8  ;;  %527 = vmatmul.mubr.f32.vlgmr.msra.gmra.mrb[0].mxu1 %v319_v28 }
  0xe1   : > { %532 = vmatprep.mubr.f32.mxu1 %v1424_v8  ;;  %963 = vmatpush3.bf16.msra.mxu0 %v962_v42  ;;  %v573_v8 = vld [vmem:[%s1794_s6 + $0x10] sm:$0xff] }
  0xe2   : > { %1000 = vmatpush3.bf16.msra.mxu1 %v962_v42  ;;  %v966_v47 = vpack.c.bf16 %v574_v46, %v573_v8  ;;  %965 = vmatprep.subr.bf16.mxu0 %v964_v45 }
  0xe3   : > { %456 = vmatmul.mubr.f32.gmra.mrb[2].mxu0 %v320_v35  ;;  %993 = vmatprep.subr.bf16.mxu1 %v964_v45 }
  0xe4   : > { %533 = vmatmul.mubr.f32.gmra.mrb[2].mxu1 %v320_v35 }
  0xe5   : > { %967 = vmatpush3.bf16.msra.mxu0 %v966_v47 }
  0xe6   : > { %1001 = vmatpush3.bf16.msra.mxu1 %v966_v47  ;;  %969 = vmatprep.subr.bf16.mxu0 %v968_v50 }
  0xe7   : > { %994 = vmatprep.subr.bf16.mxu1 %v968_v50 }
  0xe9   : > { %971 = vmatpush3.bf16.msra.mxu0 %v970_v53 }
  0xea   : > { %1002 = vmatpush3.bf16.msra.mxu1 %v970_v53  ;;  %973 = vmatprep.subr.bf16.mxu0 %v972_v56  ;;  %v317_v53 = vld [vmem:[%s1801_s15] sm:$0xff] }
  0xeb   : > { %995 = vmatprep.subr.bf16.mxu1 %v972_v56 }
  0xed   : > { %975 = vmatpush3.bf16.msra.mxu0 %v974_v59 }
  0xee   : > { %1003 = vmatpush3.bf16.msra.mxu1 %v974_v59  ;;  %977 = vmatprep.subr.bf16.mxu0 %v976_v62 }
  0xef   : > { %996 = vmatprep.subr.bf16.mxu1 %v976_v62 }
  0xf1   : > { %979 = vmatpush3.bf16.msra.mxu0 %v978_v1 }
  0xf2   : > { %1004 = vmatpush3.bf16.msra.mxu1 %v978_v1  ;;  %981 = vmatprep.subr.bf16.mxu0 %v980_v4 }
  0xf3   : > { %997 = vmatprep.subr.bf16.mxu1 %v980_v4 }
  0xf5   : > { %983 = vmatpush3.bf16.msra.mxu0 %v982_v7 }
  0xf6   : > { %1005 = vmatpush3.bf16.msra.mxu1 %v982_v7  ;;  %985 = vmatprep.subr.bf16.mxu0 %v984_v11 }
  0xf7   : > { %998 = vmatprep.subr.bf16.mxu1 %v984_v11 }
  0xf9   : > { %987 = vmatpush3.bf16.msra.mxu0 %v986_v14 }
  0xfa   : > { %1006 = vmatpush3.bf16.msra.mxu1 %v986_v14  ;;  %989 = vmatprep.subr.bf16.mxu0 %v988_v17 }
  0xfb   : > { %999 = vmatprep.subr.bf16.mxu1 %v988_v17 }
  0xfd   : > { %991 = vmatpush3.bf16.msra.mxu0 %v990_v20 }
  0xfe   : > { %1007 = vmatpush3.bf16.msra.mxu1 %v990_v20 }
 0x1b2   : > { %v451_v21 = vpop.f32.mrb[0].mxu0 }
 0x1b3   : > { %v845_v22 = vmul.f32 -1.442695, %v451_v21  ;;  %v453_v23 = vpop.f32.mrb[1].mxu0  ;;  %v528_v29 = vpop.f32.mrb[0].mxu1 }
 0x1b4   : > { %v846_v24 = vmul.f32 -1.442695, %v453_v23  ;;  %v530_v30 = vpop.f32.mrb[1].mxu1 }
 0x1b5   : > { %1146 = vpow2.f32 %v845_v22 }
 0x1b6   : > { %1148 = vpow2.f32 %v846_v24  ;;  %v457_v25 = vpop.f32.mrb[2].mxu0 }
 0x1b7   : > { %v847_v26 = vmul.f32 -1.442695, %v457_v25  ;;  %v459_v27 = vpop.f32.mrb[3].mxu0  ;;  %v534_v34 = vpop.f32.mrb[2].mxu1 }
 0x1b8   : > { %v848_v28 = vmul.f32 -1.442695, %v459_v27  ;;  %v536_v36 = vpop.f32.mrb[3].mxu1 }
 0x1b9   : > { %1150 = vpow2.f32 %v847_v26 }
 0x1ba   : > { %1152 = vpow2.f32 %v848_v28 }
 0x1bf   : > { %v1147_v31 = vpop.eup %1146 }
 0x1c0   : > { %v1149_v32 = vpop.eup %1148  ;;  %v551_v33 = vadd.f32 1.0, %v1147_v31 }
 0x1c1   : > { %v552_v35 = vadd.f32 1.0, %v1149_v32 }
 0x1c2   : > { %1154 = vrcp.f32 %v551_v33 }
 0x1c3   : > { %v1151_v37 = vpop.eup %1150  ;;  %1156 = vrcp.f32 %v552_v35 }
 0x1c4   : > { %v1153_v38 = vpop.eup %1152  ;;  %v553_v39 = vadd.f32 1.0, %v1151_v37 }
 0x1c5   : > { %v554_v40 = vadd.f32 1.0, %v1153_v38 }
 0x1c6   : > { %1158 = vrcp.f32 %v553_v39 }
 0x1c7   : > { %1160 = vrcp.f32 %v554_v40 }
 0x1cc   : > { %v1155_v41 = vpop.eup %1154 }
 0x1cd   : > { %v1157_v42 = vpop.eup %1156  ;;  %v563_v43 = vmul.f32 %v1155_v41, %v451_v21 }
 0x1ce   : > { %v564_v44 = vmul.f32 %v1157_v42, %v453_v23 }
 0x1cf   : > { %v567_v45 = vmul.f32 %v563_v43, %v528_v29 }
 0x1d0   : > { %v1159_v8 = vpop.eup %1158  ;;  %v568_v46 = vmul.f32 %v564_v44, %v530_v30 }
 0x1d1   : > { %v1161_v47 = vpop.eup %1160  ;;  %v565_v48 = vmul.f32 %v1159_v8, %v457_v25 }
 0x1d2   : > { %v566_v49 = vmul.f32 %v1161_v47, %v459_v27  ;;  %667 = vmatprep.mubr.f32.mxu0 %v568_v46 }
 0x1d3   : > { %v569_v50 = vmul.f32 %v565_v48, %v534_v34  ;;  %668 = vmatmul.mubr.f32.vlgmr.msra.gmra.mrb[4].mxu0 %v567_v45 }
 0x1d4   : > { %v570_v51 = vmul.f32 %v566_v49, %v536_v36 }
 0x1d6   : > { %672 = vmatprep.mubr.f32.mxu1 %v570_v51 }
 0x1d7   : > { %673 = vmatmul.mubr.f32.vlgmr.msra.gmra.mrb[4].mxu1 %v569_v50 }
 0x2a6   : > { %v890_v52 = vpop.f32.mrb[4].mxu0 }
 0x2a7   : > { %v891_v54 = vpop.f32.mrb[5].mxu0 }
 0x2a8   : > { %v892_v55 = vadd.f32 %v891_v54, %v890_v52 }
 0x2aa   : > { %v678_v56 = vadd.f32 %v892_v55, %v317_v53  ;;  %v893_v57 = vpop.f32.mrb[4].mxu1 }
 0x2ab   : > { %v894_v59 = vpop.f32.mrb[5].mxu1 }
 0x2ac   : > { %680 = vst [vmem:[%s1801_s15] sm:$0xff] %v678_v56  ;;  %v895_v60 = vadd.f32 %v894_v59, %v893_v57 }
 0x2ae   : > { %v679_v61 = vadd.f32 %v895_v60, %v318_v58 }
 0x2b0   : > { %681 = vst [vmem:[%s1801_s15 + $0x8] sm:$0xff] %v679_v61 }
 0x2b1 PF: > { %s857_s29 = sshll.u32 %s1404_s20, 8  ;;  %s2034_s26 = sld [smem:[#allocation27_spill]] }
 0x2b2   : > { %s696_s1 = sshll.u32 %s1801_s15, 4  ;;  %s683_s11 = scalar_lea.sflag [#allocation7], %s1775_s0  ;;  %s1918_s1 = int_to_ptr.vmem [resolvable:$true] %s696_s1 }
 0x2b3   : > { %s1272_s25 = scalar_lea.vmem %s1918_s1, 256  ;;  %p2035_p1 = scmp.ne.s32.totalorder %s2017_s7, 0 }
 0x2b4   : > { %p1273_p9 = scmp.ne.s32.totalorder %s1918_s1, %s1272_s25  ;;  %s1425_s28 = smov [#allocation11]  }
 0x2b5   : > { %s1276_s10 = sshll.u32 %s1425_s28, 4  ;;  %s1277_s10 = int_to_ptr.vmem [resolvable:$false] %s1276_s10 }
 0x2b6   : > { %p1274_p7 = pnand %p1273_p9, %p2035_p1  ;;  %s1278_s20 = scalar_lea.vmem %s1277_s10, 512 }
 0x2b7   : > { %s1915_s30 = scalar_lea.hbm %s2034_s26, %s857_s29  ;;  %p1279_p6 = scmp.lt.s32.totalorder %s1918_s1, %s1277_s10 }
 0x2b8   : > { %p1275_p12 = pneg %p1274_p7  ;;  %p1280_p10 = scmp.lt.s32.totalorder %s1278_s20, %s1272_s25 }
 0x2ba   : > { %p1281_p5 = por %p1280_p10, %p1279_p6 }
 0x2bc   : > { %p1282_p11 = pnand %p1281_p5, %p1275_p12 }
 0x2be   : > { %1285 = shalt.err (!%p1282_p11)
}
 0x2bf   : > { %s1286_s19 = scalar_lea.hbm %s1915_s30, 256  ;;  %s1290_s12 = scalar_lea.hbm %s2034_s26, 3072 }
 0x2c0   : > { %p1287_p13 = scmp.ne.s32.totalorder %s1915_s30, %s1286_s19  ;;  %p1291_p4 = scmp.lt.u32.totalorder %s1915_s30, %s2034_s26 }
 0x2c1   : > { %p1292_p2 = scmp.lt.u32.totalorder %s1290_s12, %s1286_s19  ;;  %p1294_p9 = scmp.lt.u32.totalorder %s1286_s19, %s1915_s30 }
 0x2c2   : > { %p1288_p0 = pnand %p1287_p13, %p2035_p1 }
 0x2c3   : > { %p1293_p3 = por %p1292_p2, %p1291_p4 }
 0x2c4   : > { %p1289_p8 = pneg %p1288_p0 }
 0x2c5   : > { %p1295_p7 = por %p1294_p9, %p1293_p3 }
 0x2c7   : > { %p1296_p12 = pnand %p1295_p7, %p1289_p8 }
 0x2c9   : > { %1299 = shalt.err (!%p1296_p12)
}
 0x2ca   : > { %s1426_s15 = smov 128   ;;  %s1427_s29 = smov 8  }
 0x2cb   : > { %1018 = dma.vmem_to_hbm [thread:$0]  (%p2035_p1), %s1918_s1, 256, %s1915_s30, %s683_s11, %s1426_s15, %s1426_s15, %s1427_s29  }
 0x2cc PF: > { %s2036_s9 = sld [smem:[#allocation25_spill]]  ;;  %p1039_p6 = scmp.ge.s32.totalorder %s1412_s22, 2 }
 0x2cd   : > { %s711_s3 = sand.u32 1, %s1392_s17  }
 0x2ce   : > { %s712_s25 = scalar_lea.sflag [#allocation7], %s711_s3 }
 0x2d2   : > { %p2037_p10 = scmp.ne.s32.totalorder %s2036_s9, 0 }
 0x2d4   : > { %p1035_p5 = pnand %p1039_p6, %p2037_p10 }
 0x2d6   : > { %1363 = dma.done.wait (!%p1035_p5), %s712_s25, 256  }
 0x2d7   : > { %1365 = vsyncadd (!%p1035_p5), %s712_s25, 4294967040  ;;  %s30_s22 = sadd.s32 1, %s1412_s22   ;;  %s2038_s7 = sld [smem:[#allocation21_spill]] }
 0x2d8   : > { %p27_p11 = scmp.ge.s32.totalorder %s30_s22, 14   ;;  %s2039_s1 = sld [smem:[#allocation23_spill]] }
 0x2d9   : > { %s2040_s30 = sld [smem:[#allocation22_spill]]  ;;  %s2041_s19 = sld [smem:[#allocation24_spill]] }
 0x2da   : > { %s2042_s0 = smov %s1372_s13  ;;  %s2043_s13 = smov %s1376_s14 }
 0x2db   : > { %s2044_s14 = smov %s1729_s5  ;;  %s2045_s15 = smov %s1384_s16 }
 0x2dc   : > { %s2047_s17 = smov %s1396_s18  ;;  %s2049_s20 = smov %s1408_s21 }
 0x2dd   : > { %s2046_s16 = smov %s2038_s7  ;;  %s2050_s21 = smov %s2052_s24 }
 0x2de   :  { %29 = sbr.rel (!%p27_p11) target bundleno = 31 (0x1f), region = 109 }
 0x2df   : > { %s2048_s18 = smov %s2040_s30 }
 0x2e5   :  { %717 = vsyncpa [#allocation6], 1 }
 0x2e6   :  { %719 = vsyncpa [#allocation6 + $0x1], 1 }
 0x2e7   :  { %720 = vsyncpa [#allocation9], 1 }
 0x2e8   :  { %722 = vsyncpa [#allocation9 + $0x1], 1 }
 0x2e9   :  { %723 = vsyncpa [#allocation7], 1 }
 0x2ea   :  { %725 = vsyncpa [#allocation7 + $0x1], 1 }

</bundles_post_ra>
